<compile_context>
chip_gen: v5e
topology: v5e:2x2
jax: 0.10.0
libtpu: 0.0.40
codegen_flags: <defaults>
</compile_context>

<pallas_src>
import functools

import numpy as np

import jax
import jax.numpy as jnp
from jax.experimental import pallas as pl
from jax.experimental.pallas import tpu as pltpu


_COMPUTE_DTYPE = jnp.bfloat16      # MXU inputs; accumulation stays f32
_LANE = 128                        # head output padded to one full lane row

_COMPILER_PARAMS = pltpu.CompilerParams(
    dimension_semantics=("parallel",),       # batch axis -> megacore / 2 TCs on v7x
    vmem_limit_bytes=32 * 1024 * 1024,       # safe on v5e/v6e (128 MiB) and v7x (64 MiB)
)


# ---------------------------------------------------------------------------
# In-kernel building blocks
# ---------------------------------------------------------------------------
def _conv1_valid(x_ref, w1_ref, b1_ref, H, W, C1):
    """conv1 on the (pad=1) input slab, valid region only -> (H, W*C1) f32."""
    acc = jnp.zeros((H, W * C1), jnp.float32)
    for dh in range(3):
        acc = acc + jnp.dot(x_ref[0, dh:dh + H, :], w1_ref[dh],
                            preferred_element_type=jnp.float32)
    return jnp.maximum(acc + b1_ref[...], 0.0)


def _conv_stack(x_ref, w1_ref, b1_ref, w2_ref, b2_ref, f1_scr, H, W, C1, C2):
    """Fused conv1 -> conv2, intermediate f1 lives only in VMEM scratch."""
    f1 = _conv1_valid(x_ref, w1_ref, b1_ref, H, W, C1)           # (H, W*C1) f32

    # Zero the scratch (border rows + trailing zero column block play the role
    # of conv2's zero padding), then store the valid f1 lane-aligned at col 0.
    # Zeroed every grid step so megacore grid sharding stays correct.
    f1_scr[...] = jnp.zeros_like(f1_scr)
    f1_scr[pl.ds(1, H), pl.ds(0, W * C1)] = f1.astype(f1_scr.dtype)

    acc = jnp.zeros((H, W * C2), jnp.float32)
    for dh in range(3):
        acc = acc + jnp.dot(f1_scr[dh:dh + H, :], w2_ref[dh],
                            preferred_element_type=jnp.float32)
    return jnp.maximum(acc + b2_ref[...], 0.0)


# ---------------------------------------------------------------------------
# Pallas kernels
# ---------------------------------------------------------------------------
def _conv1_kernel(x_ref, w1_ref, b1_ref, o_ref, *, H, W, C1):
    """k == 0: conv1 only, lane-dense (H, W*C1) store."""
    o_ref[0] = _conv1_valid(x_ref, w1_ref, b1_ref, H, W, C1).astype(o_ref.dtype)


def _conv2_kernel(x_ref, w1_ref, b1_ref, w2_ref, b2_ref, o_ref, f1_scr,
                  *, H, W, C1, C2):
    """k == 1: fused conv1 -> conv2, lane-dense (H, W*C2) store."""
    f2 = _conv_stack(x_ref, w1_ref, b1_ref, w2_ref, b2_ref, f1_scr, H, W, C1, C2)
    o_ref[0] = f2.astype(o_ref.dtype)


def _logits_kernel(x_ref, w1_ref, b1_ref, w2_ref, b2_ref, wl_ref, bl_ref,
                   o_ref, f1_scr, *, H, W, C1, C2):
    """k == -1: fused conv1 -> conv2 -> GAP -> linear (lane-padded head)."""
    f2 = _conv_stack(x_ref, w1_ref, b1_ref, w2_ref, b2_ref, f1_scr, H, W, C1, C2)
    # GAP + linear folded into one matmul: wl_ref is wl tiled over W, padded to
    # 128 output lanes and pre-divided by H*W, so sum_rows(f2) @ wl == mean @ wl.
    pooled = jnp.sum(f2, axis=0, keepdims=True)                   # (1, W*C2) f32
    logits = jnp.dot(pooled, wl_ref[...],
                     preferred_element_type=jnp.float32) + bl_ref[...]
    o_ref[0] = logits.astype(o_ref.dtype)                          # (1, 128) store


# ---------------------------------------------------------------------------
# Host-side layout + pallas_call wrappers (jitted end-to-end)
# ---------------------------------------------------------------------------
def _pack_input(x, H, W, C):
    """NCHW -> (N, H+2, (W+2)*C) bf16 row-flattened slab with 1-pixel halo."""
    N = x.shape[0]
    x_nhwc = jnp.transpose(x, (0, 2, 3, 1))
    xp = jnp.pad(x_nhwc, ((0, 0), (1, 1), (1, 1), (0, 0)))
    return xp.reshape(N, H + 2, (W + 2) * C).astype(_COMPUTE_DTYPE)


@functools.partial(jax.jit, static_argnames=("H", "W", "C", "C1"))
def _forward_conv1(x, w1v, b1v, *, H, W, C, C1):
    N = x.shape[0]
    xp = _pack_input(x, H, W, C)
    f1 = pl.pallas_call(
        functools.partial(_conv1_kernel, H=H, W=W, C1=C1),
        out_shape=jax.ShapeDtypeStruct((N, H, W * C1), jnp.float32),
        grid=(N,),
        in_specs=[
            pl.BlockSpec((1, H + 2, (W + 2) * C), lambda n: (n, 0, 0)),
            pl.BlockSpec(w1v.shape, lambda n: (0, 0, 0)),
            pl.BlockSpec(b1v.shape, lambda n: (0, 0)),
        ],
        out_specs=pl.BlockSpec((1, H, W * C1), lambda n: (n, 0, 0)),
        compiler_params=_COMPILER_PARAMS,
    )(xp, w1v, b1v)
    return jnp.transpose(f1.reshape(N, H, W, C1), (0, 3, 1, 2))


@functools.partial(jax.jit, static_argnames=("H", "W", "C", "C1", "C2"))
def _forward_conv2(x, w1v, b1v, w2v, b2v, *, H, W, C, C1, C2):
    N = x.shape[0]
    xp = _pack_input(x, H, W, C)
    f2 = pl.pallas_call(
        functools.partial(_conv2_kernel, H=H, W=W, C1=C1, C2=C2),
        out_shape=jax.ShapeDtypeStruct((N, H, W * C2), jnp.float32),
        grid=(N,),
        in_specs=[
            pl.BlockSpec((1, H + 2, (W + 2) * C), lambda n: (n, 0, 0)),
            pl.BlockSpec(w1v.shape, lambda n: (0, 0, 0)),
            pl.BlockSpec(b1v.shape, lambda n: (0, 0)),
            pl.BlockSpec(w2v.shape, lambda n: (0, 0, 0)),
            pl.BlockSpec(b2v.shape, lambda n: (0, 0)),
        ],
        out_specs=pl.BlockSpec((1, H, W * C2), lambda n: (n, 0, 0)),
        scratch_shapes=[pltpu.VMEM((H + 2, (W + 1) * C1), _COMPUTE_DTYPE)],
        compiler_params=_COMPILER_PARAMS,
    )(xp, w1v, b1v, w2v, b2v)
    return jnp.transpose(f2.reshape(N, H, W, C2), (0, 3, 1, 2))


@functools.partial(jax.jit, static_argnames=("H", "W", "C", "C1", "C2", "NC"))
def _forward_logits(x, w1v, b1v, w2v, b2v, wl_pad, bl_pad,
                    *, H, W, C, C1, C2, NC):
    N = x.shape[0]
    xp = _pack_input(x, H, W, C)
    out = pl.pallas_call(
        functools.partial(_logits_kernel, H=H, W=W, C1=C1, C2=C2),
        out_shape=jax.ShapeDtypeStruct((N, 1, _LANE), jnp.float32),
        grid=(N,),
        in_specs=[
            pl.BlockSpec((1, H + 2, (W + 2) * C), lambda n: (n, 0, 0)),
            pl.BlockSpec(w1v.shape, lambda n: (0, 0, 0)),
            pl.BlockSpec(b1v.shape, lambda n: (0, 0)),
            pl.BlockSpec(w2v.shape, lambda n: (0, 0, 0)),
            pl.BlockSpec(b2v.shape, lambda n: (0, 0)),
            pl.BlockSpec(wl_pad.shape, lambda n: (0, 0)),
            pl.BlockSpec(bl_pad.shape, lambda n: (0, 0)),
        ],
        out_specs=pl.BlockSpec((1, 1, _LANE), lambda n: (n, 0, 0)),
        scratch_shapes=[pltpu.VMEM((H + 2, (W + 1) * C1), _COMPUTE_DTYPE)],
        compiler_params=_COMPILER_PARAMS,
    )(xp, w1v, b1v, w2v, b2v, wl_pad, bl_pad)
    return out[:, 0, :NC]


# ---------------------------------------------------------------------------
# Host-side parameter packing (one-time, tiny)
# ---------------------------------------------------------------------------
def _banded_conv_weight(w_hwio, in_blocks, out_blocks, in_offset, dtype,
                        zero_block=None):
    """Fold a 3x3 conv weight (kh, kw, cin, cout) into 3 block-banded matrices.

    big[dh, c*cin + ci, q*cout + co] = w[dh, dw, ci, co] with
        c = q + dw + in_offset,   remapped to `zero_block` if c is outside
        [0, zero_block) (i.e. a tap that lands in conv padding is pointed at a
        column block that is guaranteed to hold zeros), so that
        out[h, q*cout+co] = sum_dh  rows[h+dh, :] @ big[dh]
    computes the conv on the (rows, width*channels) flattened layout.
    """
    kh, kw, cin, cout = w_hwio.shape
    big = np.zeros((kh, in_blocks * cin, out_blocks * cout), np.float32)
    for dh in range(kh):
        for dw in range(kw):
            for q in range(out_blocks):
                c = q + dw + in_offset
                if zero_block is not None and not (0 <= c < zero_block):
                    c = zero_block
                big[dh, c * cin:(c + 1) * cin, q * cout:(q + 1) * cout] = w_hwio[dh, dw]
    return jnp.asarray(big, dtype)


# ---------------------------------------------------------------------------
# Concrete BaseModel
# ---------------------------------------------------------------------------
class PallasBaseModel:
    """Concrete implementation of the BaseModel interface backed by Pallas."""

    def __init__(self, in_channels=4, num_classes=10, key=None):
        if key is None:
            key = jax.random.PRNGKey(0)
        k1, k2, k3, k4, k5, k6 = jax.random.split(key, 6)
        c1, c2 = 8, 16
        self.cin, self.c1, self.c2, self.num_classes = in_channels, c1, c2, num_classes

        # "true" f32 master weights (HWIO conv layout), kept on host.
        self.w1 = np.asarray(jax.random.normal(k1, (3, 3, in_channels, c1))
                             * (1.0 / (9 * in_channels) ** 0.5), np.float32)
        self.b1 = np.asarray(jax.random.normal(k2, (c1,)) * 0.1, np.float32)
        self.w2 = np.asarray(jax.random.normal(k3, (3, 3, c1, c2))
                             * (1.0 / (9 * c1) ** 0.5), np.float32)
        self.b2 = np.asarray(jax.random.normal(k4, (c2,)) * 0.1, np.float32)
        self.wl = np.asarray(jax.random.normal(k5, (c2, num_classes))
                             * (1.0 / c2 ** 0.5), np.float32)
        self.bl = np.asarray(jax.random.normal(k6, (num_classes,)) * 0.1, np.float32)

        self._param_cache = {}   # (H, W) -> packed device params

    # -- kernel-layout params (banded weights depend on the spatial width) ----
    def _device_params(self, H, W):
        key = (H, W)
        if key not in self._param_cache:
            cd = _COMPUTE_DTYPE
            c2, NC = self.c2, self.num_classes
            # conv1: input is physically padded (pad=1) -> (W+2) input blocks.
            w1v = _banded_conv_weight(self.w1, W + 2, W, 0, cd)
            # conv2: scratch has W valid blocks + 1 trailing zero block; taps
            # that fall in padding are remapped onto that zero block.
            w2v = _banded_conv_weight(self.w2, W + 1, W, -1, cd, zero_block=W)
            b1v = jnp.asarray(np.tile(self.b1, W)[None, :], jnp.float32)
            b2v = jnp.asarray(np.tile(self.b2, W)[None, :], jnp.float32)
            # GAP + linear as one matmul: tile wl over W, pre-divide by H*W,
            # pad classes to a full 128-lane row (unmasked store in-kernel).
            wl_pad = np.zeros((W * c2, _LANE), np.float32)
            wl_pad[:, :NC] = np.tile(self.wl / float(H * W), (W, 1))
            bl_pad = np.zeros((1, _LANE), np.float32)
            bl_pad[0, :NC] = self.bl
            self._param_cache[key] = (w1v, w2v, b1v, b2v,
                                      jnp.asarray(wl_pad), jnp.asarray(bl_pad))
        return self._param_cache[key]

    def reference_params(self):
        return tuple(jnp.asarray(p) for p in
                     (self.w1, self.b1, self.w2, self.b2, self.wl, self.bl))

    # -- BaseModel interface ---------------------------------------------------
    def forward(self, x, k=-1, train=True):
        """
        :param x: input, NCHW (PyTorch convention), float32
        :param k: k in {0,1} -> feature maps of the k-th conv2d (NCHW);
                  k = -1   -> logits
        :param train: unused
        """
        # TODO(synk): `train` has no effect — no dropout/batch-norm in this
        # concrete model.
        if k not in (-1, 0, 1):
            raise ValueError(
                f"k must be -1 (logits) or 0/1 (conv feature maps); got {k}")
        N, C, H, W = x.shape
        if C != self.cin:
            raise ValueError(f"expected {self.cin} input channels, got {C}")

        w1v, w2v, b1v, b2v, wl_pad, bl_pad = self._device_params(H, W)

        if k == 0:
            return _forward_conv1(x, w1v, b1v, H=H, W=W, C=C, C1=self.c1)
        if k == 1:
            return _forward_conv2(x, w1v, b1v, w2v, b2v,
                                  H=H, W=W, C=C, C1=self.c1, C2=self.c2)
        return _forward_logits(x, w1v, b1v, w2v, b2v, wl_pad, bl_pad,
                               H=H, W=W, C=C, C1=self.c1, C2=self.c2,
                               NC=self.num_classes)

    def get_num_layers(self):
        return 3   # conv1, conv2, linear head

    def __repr__(self):
        return (f"PallasBaseModel(conv3x3 {self.cin}->{self.c1} -> "
                f"conv3x3 {self.c1}->{self.c2} -> GAP -> "
                f"Linear({self.c2},{self.num_classes}))")


# ---------------------------------------------------------------------------
# Pure-JAX reference (for correctness validation only)
# ---------------------------------------------------------------------------
def _reference_forward(x, params, k):
    w1, b1, w2, b2, wl, bl = params
    dn = ("NHWC", "HWIO", "NHWC")
    xh = jnp.transpose(x, (0, 2, 3, 1))
    f1 = jax.lax.conv_general_dilated(xh, w1, (1, 1), "SAME", dimension_numbers=dn)
    f1 = jnp.maximum(f1 + b1, 0.0)
    if k == 0:
        return jnp.transpose(f1, (0, 3, 1, 2))
    f2 = jax.lax.conv_general_dilated(f1, w2, (1, 1), "SAME", dimension_numbers=dn)
    f2 = jnp.maximum(f2 + b2, 0.0)
    if k == 1:
        return jnp.transpose(f2, (0, 3, 1, 2))
    pooled = jnp.mean(f2, axis=(1, 2))
    return pooled @ wl + bl


# ---------------------------------------------------------------------------
if __name__ == "__main__":
    model = PallasBaseModel(in_channels=4, num_classes=10, key=jax.random.PRNGKey(0))
    x = jax.random.normal(jax.random.PRNGKey(0), (2, 4, 16, 16), jnp.float32)

    logits = jax.block_until_ready(model.forward(x, k=-1))
    fm0 = jax.block_until_ready(model.forward(x, k=0))
    fm1 = jax.block_until_ready(model.forward(x, k=1))

    assert logits.shape == (2, 10)
    assert fm0.shape == (2, 8, 16, 16)
    assert fm1.shape == (2, 16, 16, 16)
    assert bool(jnp.all(jnp.isfinite(logits)))
    assert bool(jnp.all(jnp.isfinite(fm0)))
    assert bool(jnp.all(jnp.isfinite(fm1)))

    # validate against a pure-JAX f32 reference (loose tol: bf16 MXU inputs)
    params = model.reference_params()
    ref_logits = _reference_forward(x, params, -1)
    ref_fm0 = _reference_forward(x, params, 0)
    ref_fm1 = _reference_forward(x, params, 1)
    assert bool(jnp.allclose(logits, ref_logits, rtol=1e-1, atol=1e-1))
    assert bool(jnp.allclose(fm0, ref_fm0, rtol=1e-1, atol=1e-1))
    assert bool(jnp.allclose(fm1, ref_fm1, rtol=1e-1, atol=1e-1))

    # invalid k must raise (BaseModel contract: only conv indices or -1)
    try:
        model.forward(x, k=2)
        raise AssertionError("k=2 should have raised ValueError")
    except ValueError:
        pass

    print("KERNEL_OK")
</pallas_src>

<mosaic_0001>
module attributes {stable_mosaic.version = 11 : i64} {
  func.func @_logits_kernel(%arg0: i32, %arg1: memref<1x18x72xbf16, #tpu.memory_space<vmem>>, %arg2: memref<3x72x128xbf16, #tpu.memory_space<vmem>>, %arg3: memref<1x128xf32, #tpu.memory_space<vmem>>, %arg4: memref<3x136x256xbf16, #tpu.memory_space<vmem>>, %arg5: memref<1x256xf32, #tpu.memory_space<vmem>>, %arg6: memref<256x128xf32, #tpu.memory_space<vmem>>, %arg7: memref<1x128xf32, #tpu.memory_space<vmem>>, %arg8: memref<1x1x128xf32, #tpu.memory_space<vmem>>, %arg9: memref<18x136xbf16, #tpu.memory_space<vmem>>) attributes {dimension_semantics = [#tpu.dimension_semantics<parallel>], iteration_bounds = array<i64: 2>, scalar_prefetch = 0 : i64, scratch_operands = 1 : i64, tpu.core_type = #tpu.core_type<tc>, window_params = [{transform_indices = @transform_0, window_bounds = array<i64: 1, 18, 72>}, {pipeline_mode = #tpu.pipeline_mode<synchronous>, transform_indices = @transform_1, window_bounds = array<i64: 3, 72, 128>}, {pipeline_mode = #tpu.pipeline_mode<synchronous>, transform_indices = @transform_2, window_bounds = array<i64: 1, 128>}, {pipeline_mode = #tpu.pipeline_mode<synchronous>, transform_indices = @transform_3, window_bounds = array<i64: 3, 136, 256>}, {pipeline_mode = #tpu.pipeline_mode<synchronous>, transform_indices = @transform_4, window_bounds = array<i64: 1, 256>}, {pipeline_mode = #tpu.pipeline_mode<synchronous>, transform_indices = @transform_5, window_bounds = array<i64: 256, 128>}, {pipeline_mode = #tpu.pipeline_mode<synchronous>, transform_indices = @transform_6, window_bounds = array<i64: 1, 128>}, {transform_indices = @transform_7, window_bounds = array<i64: 1, 1, 128>}]} {
    %cst = arith.constant 0.000000e+00 : f32
    %0 = vector.broadcast %cst : f32 to vector<16x128xf32>
    %c0 = arith.constant 0 : index
    %c0_0 = arith.constant 0 : index
    %c0_1 = arith.constant 0 : index
    %1 = vector.load %arg1[%c0, %c0_0, %c0_1] : memref<1x18x72xbf16, #tpu.memory_space<vmem>>, vector<1x16x72xbf16>
    %2 = vector.shape_cast %1 : vector<1x16x72xbf16> to vector<16x72xbf16>
    %c0_2 = arith.constant 0 : index
    %c0_3 = arith.constant 0 : index
    %c0_4 = arith.constant 0 : index
    %3 = vector.load %arg2[%c0_2, %c0_3, %c0_4] : memref<3x72x128xbf16, #tpu.memory_space<vmem>>, vector<1x72x128xbf16>
    %4 = vector.shape_cast %3 : vector<1x72x128xbf16> to vector<72x128xbf16>
    %cst_5 = arith.constant dense<0.000000e+00> : vector<16x128xf32>
    %5 = tpu.matmul %2, %4, %cst_5 {dimension_numbers = #tpu.dot_dimension_numbers<[1], [0], [0], [1], [0, 0, 1, 1], [], []>} : vector<16x72xbf16>, vector<72x128xbf16>, vector<16x128xf32> -> vector<16x128xf32>
    %6 = arith.addf %0, %5 : vector<16x128xf32>
    %c0_6 = arith.constant 0 : index
    %c1 = arith.constant 1 : index
    %c0_7 = arith.constant 0 : index
    %7 = vector.load %arg1[%c0_6, %c1, %c0_7] : memref<1x18x72xbf16, #tpu.memory_space<vmem>>, vector<1x16x72xbf16>
    %8 = vector.shape_cast %7 : vector<1x16x72xbf16> to vector<16x72xbf16>
    %c1_8 = arith.constant 1 : index
    %c0_9 = arith.constant 0 : index
    %c0_10 = arith.constant 0 : index
    %9 = vector.load %arg2[%c1_8, %c0_9, %c0_10] : memref<3x72x128xbf16, #tpu.memory_space<vmem>>, vector<1x72x128xbf16>
    %10 = vector.shape_cast %9 : vector<1x72x128xbf16> to vector<72x128xbf16>
    %cst_11 = arith.constant dense<0.000000e+00> : vector<16x128xf32>
    %11 = tpu.matmul %8, %10, %cst_11 {dimension_numbers = #tpu.dot_dimension_numbers<[1], [0], [0], [1], [0, 0, 1, 1], [], []>} : vector<16x72xbf16>, vector<72x128xbf16>, vector<16x128xf32> -> vector<16x128xf32>
    %12 = arith.addf %6, %11 : vector<16x128xf32>
    %c0_12 = arith.constant 0 : index
    %c2 = arith.constant 2 : index
    %c0_13 = arith.constant 0 : index
    %13 = vector.load %arg1[%c0_12, %c2, %c0_13] : memref<1x18x72xbf16, #tpu.memory_space<vmem>>, vector<1x16x72xbf16>
    %14 = vector.shape_cast %13 : vector<1x16x72xbf16> to vector<16x72xbf16>
    %c2_14 = arith.constant 2 : index
    %c0_15 = arith.constant 0 : index
    %c0_16 = arith.constant 0 : index
    %15 = vector.load %arg2[%c2_14, %c0_15, %c0_16] : memref<3x72x128xbf16, #tpu.memory_space<vmem>>, vector<1x72x128xbf16>
    %16 = vector.shape_cast %15 : vector<1x72x128xbf16> to vector<72x128xbf16>
    %cst_17 = arith.constant dense<0.000000e+00> : vector<16x128xf32>
    %17 = tpu.matmul %14, %16, %cst_17 {dimension_numbers = #tpu.dot_dimension_numbers<[1], [0], [0], [1], [0, 0, 1, 1], [], []>} : vector<16x72xbf16>, vector<72x128xbf16>, vector<16x128xf32> -> vector<16x128xf32>
    %18 = arith.addf %12, %17 : vector<16x128xf32>
    %c0_18 = arith.constant 0 : index
    %c0_19 = arith.constant 0 : index
    %19 = vector.load %arg3[%c0_18, %c0_19] : memref<1x128xf32, #tpu.memory_space<vmem>>, vector<1x128xf32>
    %20 = vector.broadcast %19 : vector<1x128xf32> to vector<16x128xf32>
    %21 = arith.addf %18, %20 : vector<16x128xf32>
    %cst_20 = arith.constant 0.000000e+00 : f32
    %22 = vector.broadcast %cst_20 : f32 to vector<16x128xf32>
    %23 = arith.maximumf %21, %22 : vector<16x128xf32>
    %cst_21 = arith.constant 0.000000e+00 : bf16
    %24 = vector.broadcast %cst_21 : bf16 to vector<18x136xbf16>
    %c0_22 = arith.constant 0 : index
    %c0_23 = arith.constant 0 : index
    %25 = vector.load %arg9[%c0_22, %c0_23] : memref<18x136xbf16, #tpu.memory_space<vmem>>, vector<18x136xbf16>
    tpu.vector_store %arg9[%c0_22, %c0_23], %24 {strides = array<i32>} : memref<18x136xbf16, #tpu.memory_space<vmem>>, vector<18x136xbf16>,
    %26 = arith.truncf %23 : vector<16x128xf32> to vector<16x128xbf16>
    %c1_24 = arith.constant 1 : index
    %c0_25 = arith.constant 0 : index
    %27 = vector.load %arg9[%c1_24, %c0_25] : memref<18x136xbf16, #tpu.memory_space<vmem>>, vector<16x128xbf16>
    tpu.vector_store %arg9[%c1_24, %c0_25], %26 {strides = array<i32>} : memref<18x136xbf16, #tpu.memory_space<vmem>>, vector<16x128xbf16>,
    %cst_26 = arith.constant 0.000000e+00 : f32
    %28 = vector.broadcast %cst_26 : f32 to vector<16x256xf32>
    %c0_27 = arith.constant 0 : index
    %c0_28 = arith.constant 0 : index
    %29 = vector.load %arg9[%c0_27, %c0_28] : memref<18x136xbf16, #tpu.memory_space<vmem>>, vector<16x136xbf16>
    %c0_29 = arith.constant 0 : index
    %c0_30 = arith.constant 0 : index
    %c0_31 = arith.constant 0 : index
    %30 = vector.load %arg4[%c0_29, %c0_30, %c0_31] : memref<3x136x256xbf16, #tpu.memory_space<vmem>>, vector<1x136x256xbf16>
    %31 = vector.shape_cast %30 : vector<1x136x256xbf16> to vector<136x256xbf16>
    %cst_32 = arith.constant dense<0.000000e+00> : vector<16x256xf32>
    %32 = tpu.matmul %29, %31, %cst_32 {dimension_numbers = #tpu.dot_dimension_numbers<[1], [0], [0], [1], [0, 0, 1, 1], [], []>} : vector<16x136xbf16>, vector<136x256xbf16>, vector<16x256xf32> -> vector<16x256xf32>
    %33 = arith.addf %28, %32 : vector<16x256xf32>
    %c1_33 = arith.constant 1 : index
    %c0_34 = arith.constant 0 : index
    %34 = vector.load %arg9[%c1_33, %c0_34] : memref<18x136xbf16, #tpu.memory_space<vmem>>, vector<16x136xbf16>
    %c1_35 = arith.constant 1 : index
    %c0_36 = arith.constant 0 : index
    %c0_37 = arith.constant 0 : index
    %35 = vector.load %arg4[%c1_35, %c0_36, %c0_37] : memref<3x136x256xbf16, #tpu.memory_space<vmem>>, vector<1x136x256xbf16>
    %36 = vector.shape_cast %35 : vector<1x136x256xbf16> to vector<136x256xbf16>
    %cst_38 = arith.constant dense<0.000000e+00> : vector<16x256xf32>
    %37 = tpu.matmul %34, %36, %cst_38 {dimension_numbers = #tpu.dot_dimension_numbers<[1], [0], [0], [1], [0, 0, 1, 1], [], []>} : vector<16x136xbf16>, vector<136x256xbf16>, vector<16x256xf32> -> vector<16x256xf32>
    %38 = arith.addf %33, %37 : vector<16x256xf32>
    %c2_39 = arith.constant 2 : index
    %c0_40 = arith.constant 0 : index
    %39 = vector.load %arg9[%c2_39, %c0_40] : memref<18x136xbf16, #tpu.memory_space<vmem>>, vector<16x136xbf16>
    %c2_41 = arith.constant 2 : index
    %c0_42 = arith.constant 0 : index
    %c0_43 = arith.constant 0 : index
    %40 = vector.load %arg4[%c2_41, %c0_42, %c0_43] : memref<3x136x256xbf16, #tpu.memory_space<vmem>>, vector<1x136x256xbf16>
    %41 = vector.shape_cast %40 : vector<1x136x256xbf16> to vector<136x256xbf16>
    %cst_44 = arith.constant dense<0.000000e+00> : vector<16x256xf32>
    %42 = tpu.matmul %39, %41, %cst_44 {dimension_numbers = #tpu.dot_dimension_numbers<[1], [0], [0], [1], [0, 0, 1, 1], [], []>} : vector<16x136xbf16>, vector<136x256xbf16>, vector<16x256xf32> -> vector<16x256xf32>
    %43 = arith.addf %38, %42 : vector<16x256xf32>
    %c0_45 = arith.constant 0 : index
    %c0_46 = arith.constant 0 : index
    %44 = vector.load %arg5[%c0_45, %c0_46] : memref<1x256xf32, #tpu.memory_space<vmem>>, vector<1x256xf32>
    %45 = vector.broadcast %44 : vector<1x256xf32> to vector<16x256xf32>
    %46 = arith.addf %43, %45 : vector<16x256xf32>
    %cst_47 = arith.constant 0.000000e+00 : f32
    %47 = vector.broadcast %cst_47 : f32 to vector<16x256xf32>
    %48 = arith.maximumf %46, %47 : vector<16x256xf32>
    %cst_48 = arith.constant dense<0.000000e+00> : vector<256xf32>
    %49 = vector.multi_reduction <add>, %48, %cst_48 [0] : vector<16x256xf32> to vector<256xf32>
    %50 = vector.shape_cast %49 : vector<256xf32> to vector<1x256xf32>
    %c0_49 = arith.constant 0 : index
    %c0_50 = arith.constant 0 : index
    %51 = vector.load %arg6[%c0_49, %c0_50] : memref<256x128xf32, #tpu.memory_space<vmem>>, vector<256x128xf32>
    %cst_51 = arith.constant dense<0.000000e+00> : vector<1x128xf32>
    %52 = tpu.matmul %50, %51, %cst_51 {dimension_numbers = #tpu.dot_dimension_numbers<[1], [0], [0], [1], [0, 0, 1, 1], [], []>} : vector<1x256xf32>, vector<256x128xf32>, vector<1x128xf32> -> vector<1x128xf32>
    %c0_52 = arith.constant 0 : index
    %c0_53 = arith.constant 0 : index
    %53 = vector.load %arg7[%c0_52, %c0_53] : memref<1x128xf32, #tpu.memory_space<vmem>>, vector<1x128xf32>
    %54 = arith.addf %52, %53 : vector<1x128xf32>
    %c0_54 = arith.constant 0 : index
    %c0_55 = arith.constant 0 : index
    %c0_56 = arith.constant 0 : index
    %55 = vector.load %arg8[%c0_54, %c0_55, %c0_56] : memref<1x1x128xf32, #tpu.memory_space<vmem>>, vector<1x1x128xf32>
    %56 = vector.shape_cast %55 : vector<1x1x128xf32> to vector<1x128xf32>
    %57 = vector.shape_cast %54 : vector<1x128xf32> to vector<1x1x128xf32>
    tpu.vector_store %arg8[%c0_54, %c0_55, %c0_56], %57 {strides = array<i32>} : memref<1x1x128xf32, #tpu.memory_space<vmem>>, vector<1x1x128xf32>,
    return
  }
  func.func @transform_0(%arg0: i32) -> (i32, i32, i32) {
    %c0_i32 = arith.constant 0 : i32
    %c0_i32_0 = arith.constant 0 : i32
    %c0_i32_1 = arith.constant 0 : i32
    return %arg0, %c0_i32, %c0_i32_0 : i32, i32, i32
  }
  func.func @transform_1(%arg0: i32) -> (i32, i32, i32) {
    %c0_i32 = arith.constant 0 : i32
    %c0_i32_0 = arith.constant 0 : i32
    %c0_i32_1 = arith.constant 0 : i32
    %c0_i32_2 = arith.constant 0 : i32
    return %c0_i32, %c0_i32_0, %c0_i32_1 : i32, i32, i32
  }
  func.func @transform_2(%arg0: i32) -> (i32, i32) {
    %c0_i32 = arith.constant 0 : i32
    %c0_i32_0 = arith.constant 0 : i32
    %c0_i32_1 = arith.constant 0 : i32
    return %c0_i32, %c0_i32_0 : i32, i32
  }
  func.func @transform_3(%arg0: i32) -> (i32, i32, i32) {
    %c0_i32 = arith.constant 0 : i32
    %c0_i32_0 = arith.constant 0 : i32
    %c0_i32_1 = arith.constant 0 : i32
    %c0_i32_2 = arith.constant 0 : i32
    return %c0_i32, %c0_i32_0, %c0_i32_1 : i32, i32, i32
  }
  func.func @transform_4(%arg0: i32) -> (i32, i32) {
    %c0_i32 = arith.constant 0 : i32
    %c0_i32_0 = arith.constant 0 : i32
    %c0_i32_1 = arith.constant 0 : i32
    return %c0_i32, %c0_i32_0 : i32, i32
  }
  func.func @transform_5(%arg0: i32) -> (i32, i32) {
    %c0_i32 = arith.constant 0 : i32
    %c0_i32_0 = arith.constant 0 : i32
    %c0_i32_1 = arith.constant 0 : i32
    return %c0_i32, %c0_i32_0 : i32, i32
  }
  func.func @transform_6(%arg0: i32) -> (i32, i32) {
    %c0_i32 = arith.constant 0 : i32
    %c0_i32_0 = arith.constant 0 : i32
    %c0_i32_1 = arith.constant 0 : i32
    return %c0_i32, %c0_i32_0 : i32, i32
  }
  func.func @transform_7(%arg0: i32) -> (i32, i32, i32) {
    %c0_i32 = arith.constant 0 : i32
    %c0_i32_0 = arith.constant 0 : i32
    %c0_i32_1 = arith.constant 0 : i32
    return %arg0, %c0_i32, %c0_i32_0 : i32, i32, i32
  }
}

</mosaic_0001>

<bundles_post_ra>
// kernel: _forward_logits.1
= control target key start
LH: loop header
LB: loop body
LE: loop exit
PB: predicated region body
PF: predicated region fallthrough
CT: control target
= control target key end

     0   :  { %12 = vsyncpa [#allocation4], 0  ;;  %s2420_s0 = inlined_call_operand.vmem [shape: bf16[2,18,72], index: 0, kind: input, shape index: {}]   ;;  %s2421_s1 = inlined_call_operand.vmem [shape: bf16[3,72,128], index: 1, kind: input, shape index: {}]   ;;  %s2422_s2 = inlined_call_operand.vmem [shape: f32[1,128], index: 2, kind: input, shape index: {}]   ;;  %s2423_s3 = inlined_call_operand.vmem [shape: bf16[3,136,256], index: 3, kind: input, shape index: {}]   ;;  %s2424_s4 = inlined_call_operand.vmem [shape: f32[1,256], index: 4, kind: input, shape index: {}]   ;;  %s2425_s5 = inlined_call_operand.hbm [shape: f32[256,128], index: 5, kind: input, shape index: {}]   ;;  %s2426_s6 = inlined_call_operand.vmem [shape: f32[1,128], index: 6, kind: input, shape index: {}]   ;;  %s2427_s7 = inlined_call_operand.hbm [shape: f32[2,1,128], index: 7, kind: output, shape index: {}]  }
   0x1   :  { %13 = vsyncpa [#allocation5], 0 }
   0x2   :  { %15 = vsyncpa [#allocation5 + $0x1], 0  ;;  %s1870_s24 = smov 0   ;;  %s1872_s25 = smov 0  }
   0x3   :  { %s1874_s26 = smov 0   ;;  %s1876_s27 = smov 0  }
   0x4 LB: > { %s1891_s28 = sadd.s32 4294967295, %s1824_s27   ;;  %s1296_s29 = sadd.s32 4294967294, %s1824_s27   ;;  %s1824_s27 = sphi %s1876_s27, %s2439_s27   ;;  %s1820_s26 = sphi %s1874_s26, %s2438_s26   ;;  %s1816_s25 = sphi %s1872_s25, %s2437_s25   ;;  %s1812_s24 = sphi %s1870_s24, %s2436_s24  }
   0x5   : > { %s1895_s30 = sadd.s32 1, %s1824_s27   ;;  %s180_s8 = sadd.s32 1, %s1820_s26 }
   0x6   : > { %s177_s9 = ssub.s32 %s1824_s27, %s1895_s30  ;;  %p190_p0 = scmp.ne.s32.totalorder %s1820_s26, %s1816_s25 }
   0x7   : > { %p178_p1 = scmp.eq.s32.totalorder %s177_s9, 0  ;;  %p191_p2 = scmp.eq.s32.totalorder %s1891_s28, 1 }
   0x8   : > { %p196_p3 = scmp.ne.s32.totalorder %s1816_s25, %s1812_s24  ;;  %p197_p4 = scmp.eq.s32.totalorder %s1296_s29, 1 }
   0x9   : > { %s1906_s10 = scalar_select %p178_p1, %s1820_s26, %s180_s8  }
   0xa   : > { %p1908_p5 = por %p191_p2, %p190_p0  ;;  %p1912_p6 = por %p197_p4, %p196_p3 }
   0xb   : > { %p1297_p7 = scmp.ge.s32.totalorder %s1824_s27, 1  ;;  %p204_p8 = scmp.lt.s32.totalorder %s1824_s27, 3 }
   0xc   : > { %p1688_p9 = scmp.eq.s32.totalorder %s1891_s28, 0  ;;  %s227_s15 = sshll.u32 %s2425_s5, 4  ;;  %s228_s15 = int_to_ptr.hbm [resolvable:$true] %s227_s15 }
   0xd   : > { %p205_p10 = pnand %p1297_p7, %p204_p8  ;;  %s1826_s16 = smov [#allocation3]  }
   0xe   : > { %s229_s17 = sshll.u32 %s1826_s16, 4  ;;  %s1827_s18 = smov 128   ;;  %s230_s17 = int_to_ptr.vmem [resolvable:$true] %s229_s17 }
   0xf   : > { %p1680_p11 = pneg %p205_p10  ;;  %s1828_s19 = smov 8  }
  0x10   : > { %256 = sbr.rel (%p205_p10) target bundleno = 577 (0x241), region = 48 }
  0x11   : > { %p1681_p12 = pnand %p1688_p9, %p1680_p11 }
  0x13   : > { %1683 = dma.hbm_to_vmem [thread:$0]  (!%p1681_p12), %s228_s15, 4096, %s230_s17, [#allocation4], %s1827_s18, %s1827_s18, %s1828_s19  }
  0x15   : > { %1803 = dma.done.wait (%p1688_p9), [#allocation4], 4096  }
  0x16   : > { %1805 = vsyncadd (%p1688_p9), [#allocation4], 4294963200  ;;  %p288_p13 = scmp.lt.s32.totalorder %s1891_s28, 1  ;;  %v304_v0 = vld [vmem:[%s2421_s1 + $0x20] sm:$0xf]  ;;  %vm368_vm0 = vcmask 1043456   ;;  %s1225_s23 = scalar_lea.hbm %s2427_s7, %s1891_s28 }
  0x17   : > { %v1311_v1 = vld [vmem:[%s2421_s1 + $0x44] sm:$0xf]  ;;  %v403_v2 = vunpack.c.l.b16 %v304_v0  ;;  %v1609_v9 = vld [vmem:[%s2421_s1 + $0x18] sm:$0xff]  ;;  %v1354_v13 = vld [vmem:[%s2421_s1 + $0x68] sm:$0xf]  ;;  %vm364_vm2 = vcmask 588800  }
  0x18   : > { %s289_s20 = scalar_select %p288_p13, %s1891_s28, 1  ;;  %v354_v3 = vunpack.c.l.b16 %v1311_v1  ;;  %v1613_v10 = vld [vmem:[%s2421_s1 + $0x3c] sm:$0xff]  ;;  %v1608_v14 = vld [vmem:[%s2421_s1 + $0x10] sm:$0xff]  ;;  %v467_v18 = vunpack.c.l.b16 %v1354_v13  ;;  %v1607_v19 = vld [vmem:[%s2421_s1 + $0x8] sm:$0xff]  ;;  %vm324_vm1 = vsmask.f32 7424 }
  0x19   : > { %v408_v4 = vpack.c.b16 %v403_v2, %v403_v2  ;;  %v1612_v15 = vld [vmem:[%s2421_s1 + $0x34] sm:$0xff]  ;;  %v1611_v20 = vld [vmem:[%s2421_s1 + $0x2c] sm:$0xff]  ;;  %v1606_v25 = vld [vmem:[%s2421_s1] sm:$0xff]  ;;  %vm446_vm3 = vcmask 1046528   ;;  %vm507_vm4 = vcmask 64516   ;;  %v1829_v59 = vmov 0  }
  0x1a   : > { %s1673_s21 = smul.u32 12, %s289_s20  ;;  %v359_v5 = vpack.c.b16 %v354_v3, %v354_v3  ;;  %v472_v24 = vpack.c.b16 %v467_v18, %v467_v18  ;;  %v1610_v27 = vld [vmem:[%s2421_s1 + $0x24] sm:$0xff]  ;;  %v1616_v32 = vld [vmem:[%s2421_s1 + $0x58] sm:$0xff]  ;;  %v1615_v35 = vld [vmem:[%s2421_s1 + $0x50] sm:$0xff]  ;;  %vm511_vm6 = vcmask 1040384   ;;  %vm512_vm7 = vcmask 61444  }
  0x1b   : > { %v416_v7 = vsel %vm368_vm0, %v408_v4, 0  ;;  %v1617_v31 = vld [vmem:[%s2421_s1 + $0x60] sm:$0xff]  ;;  %v1614_v37 = vld [vmem:[%s2421_s1 + $0x48] sm:$0xff]  ;;  %v1447_v41 = vld [vmem:[%s2423_s3 + $0xf8] sm:$0xf]  ;;  %vm713_vm15 = vcmask 64512  }
  0x1c   : > { %s1939_s14 = scalar_lea.vmem %s2420_s0, %s1673_s21  ;;  %v370_v8 = vsel %vm368_vm0, %v359_v5, 0  ;;  %421 = vmatpush.bf16.msra.mxu2 %v416_v7  ;;  %v481_v29 = vsel %vm368_vm0, %v472_v24, 0  ;;  %v1649_v42 = vld [vmem:[%s2423_s3 + $0xfc] sm:$0xf0]  ;;  %v1648_v43 = vld [vmem:[%s2423_s3 + $0xfc] sm:$0xf]  ;;  %vm508_vm5 = vmor %vm507_vm4, %vm368_vm0 }
  0x1d   : > { %v305_v6 = vld [vmem:[%s1939_s14 + $0x8] sm:$0x1]  ;;  %375 = vmatpush.bf16.msra.mxu0 %v370_v8  ;;  %v1667_v12 = vld [vmem:[%s1939_s14] sm:$0xff]   ;;  %v1448_v44 = vor.u32 %v1649_v42, %v1447_v41  ;;  %v1647_v48 = vld [vmem:[%s2423_s3 + $0xec] sm:$0xf0]  ;;  %509 = vst.msk [vmem:[#allocation2] sm:$0xff] %vm508_vm5, %v1829_v59 }
  0x1e   : > { %v321_v11 = vunpack.c.l.b16 %v305_v6  ;;  %v328_v16 = vshll.u32 %v1667_v12, 16  ;;  %v326_v21 = vshrl.u32 %v1667_v12, 16  ;;  %v1670_v33 = vld [vmem:[%s1939_s14] sm:$0xf0]  ;;  %v1671_v34 = vld [vmem:[%s1939_s14] sm:$0xe]  ;;  %vm513_vm8 = vmor %vm512_vm7, %vm511_vm6 }
  0x1f   : > { %v1672_v36 = vor.u32 %v1671_v34, %v1670_v33  ;;  %v1449_v45 = vld [vmem:[%s2423_s3 + $0x100] sm:$0xf0]  ;;  %723 = vmatpush.bf16.msra.mxu3 %v1448_v44  ;;  %v1439_v47 = vld [vmem:[%s2423_s3 + $0xe8] sm:$0xf]  ;;  %v1646_v49 = vld [vmem:[%s2423_s3 + $0xec] sm:$0xf] }
  0x20   : > { %422 = vmatpush.bf16.msra.mxu2 %v1609_v9  ;;  %v323_v17 = vpack.c.b16 %v321_v11, %v321_v11  ;;  %v330_v22 = vrot.slane %v328_v16, 1  ;;  %v1452_v46 = vor.u32 %v1648_v43, %v1449_v45  ;;  %v1440_v50 = vor.u32 %v1647_v48, %v1439_v47  ;;  %v1441_v51 = vld [vmem:[%s2423_s3 + $0xf0] sm:$0xf0]  ;;  %v1431_v53 = vld [vmem:[%s2423_s3 + $0xd8] sm:$0xf]  ;;  %510 = vst.msk [vmem:[#allocation2 + $0x8] sm:$0xff] %vm508_vm5, %v1829_v59 }
  0x21   : > { %376 = vmatpush.bf16.msra.mxu0 %v1613_v10  ;;  %v447_v38 = vrot.slane %v1672_v36, 1  ;;  %v1444_v52 = vor.u32 %v1646_v49, %v1441_v51  ;;  %v1645_v54 = vld [vmem:[%s2423_s3 + $0xdc] sm:$0xf0]  ;;  %v1644_v55 = vld [vmem:[%s2423_s3 + $0xdc] sm:$0xf]  ;;  %s286_s20 = sand.u32 1, %s1816_s25  }
  0x22   : > { %v333_v23 = vshll.u32 %v323_v17, 16  ;;  %v331_v26 = vor.u32 %v330_v22, %v326_v21  ;;  %v448_v39 = vrot.slane %v323_v17, 1  ;;  %751 = vmatpush.bf16.msra.mxu1 %v1452_v46  ;;  %v1432_v56 = vor.u32 %v1645_v54, %v1431_v53  ;;  %v1433_v57 = vld [vmem:[%s2423_s3 + $0xe0] sm:$0xf0]  ;;  %v1423_v60 = vld [vmem:[%s2423_s3 + $0xc8] sm:$0xf] }
  0x23   : > { %724 = vmatpush.bf16.msra.mxu3 %v1440_v50  ;;  %v1436_v58 = vor.u32 %v1644_v55, %v1433_v57  ;;  %v1643_v61 = vld [vmem:[%s2423_s3 + $0xcc] sm:$0xf0]  ;;  %v1642_v62 = vld [vmem:[%s2423_s3 + $0xcc] sm:$0xf]  ;;  %v1425_v0 = vld [vmem:[%s2423_s3 + $0xd0] sm:$0xf0] }
  0x24   : > { %423 = vmatpush.bf16.msra.mxu2 %v1608_v14  ;;  %v335_v28 = vrot.slane %v333_v23, 1  ;;  %v449_v40 = vsel %vm446_vm3, %v447_v38, %v448_v39  ;;  %v1424_v63 = vor.u32 %v1643_v61, %v1423_v60  ;;  %v1428_v1 = vor.u32 %v1642_v62, %v1425_v0  ;;  %v1415_v2 = vld [vmem:[%s2423_s3 + $0xb8] sm:$0xf]  ;;  %v1641_v3 = vld [vmem:[%s2423_s3 + $0xbc] sm:$0xf0]  ;;  %s287_s9 = scalar_lea.vmem [#allocation6], %s286_s20 }
  0x25   : > { %377 = vmatpush.bf16.msra.mxu0 %v1612_v15  ;;  %v1416_v5 = vor.u32 %v1641_v3, %v1415_v2  ;;  %v1640_v6 = vld [vmem:[%s2423_s3 + $0xbc] sm:$0xf]  ;;  %v1417_v7 = vld [vmem:[%s2423_s3 + $0xc0] sm:$0xf0]  ;;  %514 = vst.msk [vmem:[#allocation2 + $0x10] sm:$0x11] %vm513_vm8, %v1829_v59 }
  0x26   : > { %v336_v30 = vsel %vm324_vm1, %v331_v26, %v335_v28  ;;  %752 = vmatpush.bf16.msra.mxu1 %v1444_v52  ;;  %v1420_v8 = vor.u32 %v1640_v6, %v1417_v7  ;;  %v1407_v9 = vld [vmem:[%s2423_s3 + $0xa8] sm:$0xf]  ;;  %v1639_v10 = vld [vmem:[%s2423_s3 + $0xac] sm:$0xf0]  ;;  %v1409_v13 = vld [vmem:[%s2423_s3 + $0xb0] sm:$0xf0] }
  0x27   : > { %725 = vmatpush.bf16.msra.mxu3 %v1432_v56  ;;  %v1408_v11 = vor.u32 %v1639_v10, %v1407_v9  ;;  %v1399_v15 = vld [vmem:[%s2423_s3 + $0x98] sm:$0xf]  ;;  %v1637_v16 = vld [vmem:[%s2423_s3 + $0x9c] sm:$0xf0]  ;;  %v1636_v17 = vld [vmem:[%s2423_s3 + $0x9c] sm:$0xf] }
  0x28   : > { %424 = vmatpush.bf16.msra.mxu2 %v1607_v19  ;;  %v1400_v18 = vor.u32 %v1637_v16, %v1399_v15  ;;  %v1401_v19 = vld [vmem:[%s2423_s3 + $0xa0] sm:$0xf0]  ;;  %v1635_v26 = vld [vmem:[%s2423_s3 + $0x8c] sm:$0xf0]  ;;  %v1634_v28 = vld [vmem:[%s2423_s3 + $0x8c] sm:$0xf] }
  0x29   : > { %378 = vmatpush.bf16.msra.mxu0 %v1611_v20  ;;  %v1388_v20 = vld [vmem:[%s2423_s3 + $0x108] sm:$0xff]  ;;  %v1404_v22 = vor.u32 %v1636_v17, %v1401_v19  ;;  %v1633_v33 = vld [vmem:[%s2423_s3 + $0x74] sm:$0xf0]  ;;  %v1632_v38 = vld [vmem:[%s2423_s3 + $0x74] sm:$0xf]  ;;  %s1227_s13 = sshll.u32 %s287_s9, 4  ;;  %s1228_s13 = int_to_ptr.vmem [resolvable:$true] %s1227_s13 }
  0x2a   : > { %753 = vmatpush.bf16.msra.mxu1 %v1436_v58  ;;  %v678_v23 = vunpack.c.h.b16 %v1388_v20  ;;  %v1515_v39 = vld [vmem:[%s2423_s3 + $0x78] sm:$0xf0]  ;;  %v1596_v41 = vld [vmem:[%s2423_s3 + $0x180] sm:$0xf]  ;;  %v1665_v42 = vld [vmem:[%s2423_s3 + $0x184] sm:$0xf0] }
  0x2b   : > { %726 = vmatpush.bf16.msra.mxu3 %v1424_v63  ;;  %v1505_v43 = vld [vmem:[%s2423_s3 + $0x60] sm:$0xf]  ;;  %v1597_v45 = vor.u32 %v1665_v42, %v1596_v41  ;;  %v1631_v46 = vld [vmem:[%s2423_s3 + $0x64] sm:$0xf0]  ;;  %v1630_v47 = vld [vmem:[%s2423_s3 + $0x64] sm:$0xf] }
  0x2c   : > { %425 = vmatpush.bf16.msra.mxu2 %v1606_v25  ;;  %v1391_v25 = vld [vmem:[%s2423_s3 + $0x88] sm:$0xf]  ;;  %v1507_v48 = vld [vmem:[%s2423_s3 + $0x68] sm:$0xf0]  ;;  %v1588_v49 = vld [vmem:[%s2423_s3 + $0x170] sm:$0xf]  ;;  %v1506_v53 = vor.u32 %v1631_v46, %v1505_v43 }
  0x2d   : > { %379 = vmatpush.bf16.msra.mxu0 %v1610_v27  ;;  %v677_v27 = vunpack.c.l.b16 %v1388_v20  ;;  %v1663_v50 = vld [vmem:[%s2423_s3 + $0x174] sm:$0xf0]  ;;  %v1727_v52 = vld [vmem:[%s2422_s2] ss:$0 sm:$0xff]  ;;  %v1510_v54 = vor.u32 %v1630_v47, %v1507_v48  ;;  %v1497_v55 = vld [vmem:[%s2423_s3 + $0x50] sm:$0xf] }
  0x2e   : > { %754 = vmatpush.bf16.msra.mxu1 %v1428_v1  ;;  %v1589_v57 = vor.u32 %v1663_v50, %v1588_v49  ;;  %v1629_v58 = vld [vmem:[%s2423_s3 + $0x54] sm:$0xf0]  ;;  %v1628_v59 = vld [vmem:[%s2423_s3 + $0x54] sm:$0xf]  ;;  %v1499_v60 = vld [vmem:[%s2423_s3 + $0x58] sm:$0xf0] }
  0x2f   : > { %1345 = vmatmul.msk.bf16.vlgmr.msra.gmra.mxu2 %vm364_vm2, %v1667_v12  ;;  %727 = vmatpush.bf16.msra.mxu3 %v1416_v5  ;;  %v1638_v12 = vld [vmem:[%s2423_s3 + $0xac] sm:$0xf]  ;;  %v695_v34 = vpack.c.b16 %v677_v27, %v677_v27  ;;  %v1580_v62 = vld [vmem:[%s2423_s3 + $0x160] sm:$0xf]  ;;  %v1661_v63 = vld [vmem:[%s2423_s3 + $0x164] sm:$0xf0]  ;;  %v1498_v2 = vor.u32 %v1629_v58, %v1497_v55  ;;  %v1502_v3 = vor.u32 %v1628_v59, %v1499_v60 }
  0x30   : > { %486 = vmatpush.bf16.msrb.mxu2 %v481_v29  ;;  %1328 = vmatmul.msk.bf16.vlgmr.msra.gmra.mxu0 %vm364_vm2, %v336_v30  ;;  %v1412_v14 = vor.u32 %v1638_v12, %v1409_v13  ;;  %v696_v29 = vpack.c.b16 %v678_v23, %v678_v23  ;;  %v1392_v30 = vor.u32 %v1635_v26, %v1391_v25  ;;  %v1627_v6 = vld [vmem:[%s2423_s3 + $0x44] sm:$0xf0]  ;;  %v1626_v7 = vld [vmem:[%s2423_s3 + $0x44] sm:$0xf]  ;;  %v1572_v10 = vld [vmem:[%s2423_s3 + $0x150] sm:$0xf] }
  0x31   : > { %v718_v44 = vsel %vm368_vm0, %v695_v34, 0  ;;  %v1581_v5 = vor.u32 %v1661_v63, %v1580_v62  ;;  %vm541_vm9 = vsmask.f32 7938  ;;  %vm517_vm10 = vsmask.f32 256  ;;  %s1229_s14 = sshll.u32 %s1225_s23, 4  ;;  %s1230_s14 = int_to_ptr.hbm [resolvable:$true] %s1229_s14 }
  0x32   : > { %755 = vmatpush.bf16.msra.mxu1 %v1420_v8  ;;  %v721_v36 = vsel %vm368_vm0, %v696_v29, 0  ;;  %744 = vmatpush.bf16.msrb.mxu0 %v718_v44  ;;  %v1491_v8 = vld [vmem:[%s2423_s3 + $0x48] sm:$0xf0]  ;;  %v543_v20 = vld [vmem:[#allocation2] sm:$0xf]  ;;  %vm2185_vm11 = vmand %vm368_vm0, %vm541_vm9  ;;  %s1217_s15 = scalar_lea.sflag [#allocation5], %s286_s20 }
  0x33   : > { %728 = vmatpush.bf16.msra.mxu3 %v1408_v11  ;;  %v1659_v11 = vld [vmem:[%s2423_s3 + $0x154] sm:$0xf0]  ;;  %v1494_v15 = vor.u32 %v1626_v7, %v1491_v8  ;;  %v1624_v23 = vld [vmem:[%s2423_s3 + $0x34] sm:$0xf]  ;;  %v1483_v29 = vld [vmem:[%s2423_s3 + $0x38] sm:$0xf0] }
  0x34   : > { %487 = vmatpush.bf16.msrb.mxu2 %v1617_v31  ;;  %v1393_v31 = vld [vmem:[%s2423_s3 + $0x90] sm:$0xf0]  ;;  %v1573_v17 = vor.u32 %v1659_v11, %v1572_v10  ;;  %v1473_v34 = vld [vmem:[%s2423_s3 + $0x20] sm:$0xf]  ;;  %v1475_v42 = vld [vmem:[%s2423_s3 + $0x28] sm:$0xf0] }
  0x35   : > { %v1556_v43 = vld [vmem:[%s2423_s3 + $0x130] sm:$0xf]  ;;  %v1655_v44 = vld [vmem:[%s2423_s3 + $0x134] sm:$0xf0]  ;;  %vm518_vm12 = vsmask.f32 4368  ;;  %vm2252_vm14 = vmand %vm511_vm6, %vm517_vm10 }
  0x36   : > { %756 = vmatpush.bf16.msra.mxu1 %v1412_v14  ;;  %v1465_v48 = vld [vmem:[%s2423_s3 + $0x10] sm:$0xf]  ;;  %v1621_v49 = vld [vmem:[%s2423_s3 + $0x14] sm:$0xf0]  ;;  %vm2246_vm13 = vmor %vm517_vm10, %vm518_vm12  ;;  %s1772_s16 = sshra.s32 %s1230_s14, 4  ;;  %s1778_s19 = scalar_lea.hbm %s2427_s7, 2  ;;  %s1773_s16 = int_to_ptr.hbm [resolvable:$true] %s1772_s16 }
  0x37   : > { %729 = vmatpush.bf16.msra.mxu3 %v1400_v18  ;;  %v1466_v62 = vor.u32 %v1621_v49, %v1465_v48  ;;  %v1651_v10 = vld [vmem:[%s2423_s3 + $0x114] sm:$0xf0]  ;;  %s1774_s17 = scalar_lea.hbm %s1773_s16, 1  ;;  %p1779_p3 = scmp.lt.s32.totalorder %s1773_s16, %s2427_s7 }
  0x38   : > { %488 = vmatpush.bf16.msrb.mxu2 %v1616_v32  ;;  %v1513_v32 = vld [vmem:[%s2423_s3 + $0x70] sm:$0xf]  ;;  %p1775_p0 = scmp.ne.s32.totalorder %s1773_s16, %s1774_s17  ;;  %p1780_p4 = scmp.lt.s32.totalorder %s1778_s19, %s1774_s17 }
  0x3a   : > { %757 = vmatpush.bf16.msra.mxu1 %v1404_v22  ;;  %v1481_v22 = vld [vmem:[%s2423_s3 + $0x30] sm:$0xf]  ;;  %p1776_p1 = pnand %p1775_p0, %p1908_p5  ;;  %p1781_p7 = por %p1780_p4, %p1779_p3 }
  0x3b   : > { %730 = vmatpush.bf16.msra.mxu3 %v1392_v30  ;;  %v1564_v30 = vld [vmem:[%s2423_s3 + $0x140] sm:$0xf] }
  0x3c   : > { %489 = vmatpush.bf16.msrb.mxu2 %v1615_v35  ;;  %v1396_v35 = vor.u32 %v1634_v28, %v1393_v31  ;;  %v2198_v31 = vld [vmem:[%s2423_s3 + $0x80] sm:$0xff]  ;;  %p1777_p2 = pneg %p1776_p1 }
  0x3e   : > { %758 = vmatpush.bf16.msra.mxu1 %v1396_v35  ;;  %p1782_p8 = pnand %p1781_p7, %p1777_p2 }
  0x40   : > { %490 = vmatpush.bf16.msrb.mxu2 %v1614_v37  ;;  %v1514_v37 = vor.u32 %v1633_v33, %v1513_v32  ;;  %v1486_v32 = vor.u32 %v1624_v23, %v1483_v29  ;;  %v1657_v33 = vld [vmem:[%s2423_s3 + $0x144] sm:$0xf0] }
  0x42   : > { %873 = vmatpush.bf16.msrb.mxu3 %v1514_v37  ;;  %1054 = vmatpush.bf16.msrb.mxu1 %v1597_v45  ;;  %v829_v37 = vunpack.c.l.b16 %v2198_v31 }
  0x43   : > { %1371 = vmatmul.msk.bf16.vlgmr.msrb.gmra.mxu2 %vm364_vm2, %v449_v40  ;;  %v1518_v40 = vor.u32 %v1632_v38, %v1515_v39  ;;  %v1623_v38 = vld [vmem:[%s2423_s3 + $0x24] sm:$0xf0]  ;;  %v1622_v39 = vld [vmem:[%s2423_s3 + $0x24] sm:$0xf] }
  0x44   : > { %772 = vmatpush.bf16.msra.mxu2 %v721_v36  ;;  %v1474_v41 = vor.u32 %v1623_v38, %v1473_v34  ;;  %v847_v47 = vpack.c.b16 %v829_v37, %v829_v37  ;;  %v1478_v50 = vor.u32 %v1622_v39, %v1475_v42 }
  0x46   : > { %874 = vmatpush.bf16.msrb.mxu3 %v1506_v53  ;;  %1055 = vmatpush.bf16.msrb.mxu1 %v1589_v57  ;;  %v1467_v53 = vld [vmem:[%s2423_s3 + $0x18] sm:$0xf0]  ;;  %v868_v55 = vsel %vm368_vm0, %v847_v47, 0  ;;  %v1653_v57 = vld [vmem:[%s2423_s3 + $0x124] sm:$0xf0] }
  0x47   : > { %894 = vmatpush.bf16.msra.mxu0 %v868_v55 }
  0x48   : > { %901 = vmatpush.bf16.msrb.mxu2 %v1518_v40  ;;  %v1565_v40 = vor.u32 %v1657_v33, %v1564_v30 }
  0x4a   : > { %875 = vmatpush.bf16.msrb.mxu3 %v1498_v2  ;;  %1056 = vmatpush.bf16.msrb.mxu1 %v1581_v5  ;;  %v549_v2 = vld [vmem:[#allocation2 + $0x10] sm:$0x1]  ;;  %v1459_v5 = vld [vmem:[%s2423_s3 + $0x8] sm:$0xf0] }
  0x4c   : > { %902 = vmatpush.bf16.msrb.mxu2 %v1510_v54 }
  0x4e   : > { %1057 = vmatpush.bf16.msrb.mxu1 %v1573_v17  ;;  %v1537_v17 = vld [vmem:[%s2423_s3 + $0x190] sm:$0xff] }
  0x4f   : > { %v1010_v42 = vunpack.c.h.b16 %v1537_v17 }
  0x50   : > { %903 = vmatpush.bf16.msrb.mxu2 %v1502_v3 }
  0x51   : > { %v1028_v47 = vpack.c.b16 %v1010_v42, %v1010_v42  ;;  %v1150_v42 = vld [vmem:[#allocation3 + $0x40] sm:$0xff] }
  0x52   : > { %1058 = vmatpush.bf16.msrb.mxu1 %v1565_v40 }
  0x54   : > { %904 = vmatpush.bf16.msrb.mxu2 %v1494_v15 }
  0x58   : > { %905 = vmatpush.bf16.msrb.mxu2 %v1486_v32 }
  0x5c   : > { %906 = vmatpush.bf16.msrb.mxu2 %v1478_v50 }
  0xad   : > { %v381_v24 = vpop.f32.mrf.mxu0 }
  0xb2   : > { %v427_v4 = vpop.f32.mrf.mxu2 }
  0xb3   : > { %v428_v51 = vadd.f32 %v427_v4, %v381_v24  ;;  %v1489_v4 = vld [vmem:[%s2423_s3 + $0x40] sm:$0xf] }
  0xb4   : > { %v1490_v14 = vor.u32 %v1627_v6, %v1489_v4  ;;  %v1618_v4 = vld [vmem:[%s2423_s3 + $0x4] sm:$0xf] }
  0xb5   : > { %v383_v0 = vpop.f32.mrf.mxu0 }
  0xb6   : > { %876 = vmatpush.bf16.msrb.mxu3 %v1490_v14  ;;  %v1462_v14 = vor.u32 %v1618_v4, %v1459_v5  ;;  %v1658_v5 = vld [vmem:[%s2423_s3 + $0x154] sm:$0xf] }
  0xba   : > { %v2081_v21 = vpop.f32.mrf.mxu2 }
  0xbb   : > { %v430_v12 = vadd.f32 %v2081_v21, %v383_v0  ;;  %v1625_v21 = vld [vmem:[%s2423_s3 + $0x34] sm:$0xf0]  ;;  %v1457_v0 = vld [vmem:[%s2423_s3] sm:$0xf] }
  0xbc   : > { %v1482_v28 = vor.u32 %v1625_v21, %v1481_v22 }
  0xbe   : > { %877 = vmatpush.bf16.msrb.mxu3 %v1482_v28 }
  0xc2   : > { %878 = vmatpush.bf16.msrb.mxu3 %v1474_v41 }
  0xc6   : > { %v492_v56 = vpop.f32.mrf.mxu2  ;;  %879 = vmatpush.bf16.msrb.mxu3 %v1466_v62  ;;  %v1590_v62 = vld [vmem:[%s2423_s3 + $0x178] sm:$0xf0] }
  0xc7   : > { %v497_v61 = vadd.f32 %v492_v56, %v428_v51  ;;  %v1557_v51 = vor.u32 %v1655_v44, %v1556_v43  ;;  %v1548_v56 = vld [vmem:[%s2423_s3 + $0x120] sm:$0xf] }
  0xc8   : > { %v1549_v3 = vor.u32 %v1653_v57, %v1548_v56  ;;  %v1664_v56 = vld [vmem:[%s2423_s3 + $0x184] sm:$0xf]  ;;  %v1598_v57 = vld [vmem:[%s2423_s3 + $0x188] sm:$0xf0] }
  0xc9   : > { %v503_v1 = vadd.f32 %v1727_v52, %v497_v61  ;;  %1059 = vmatpush.bf16.msrb.mxu1 %v1557_v51  ;;  %v1662_v61 = vld [vmem:[%s2423_s3 + $0x174] sm:$0xf] }
  0xcb   : > { %v505_v9 = vmax.f32 %v503_v1, 0.0  ;;  %v1619_v1 = vld [vmem:[%s2423_s3 + $0x4] sm:$0xf0] }
  0xcc   : > { %v1458_v11 = vor.u32 %v1619_v1, %v1457_v0  ;;  %v1593_v0 = vor.u32 %v1662_v61, %v1590_v62  ;;  %v1660_v1 = vld [vmem:[%s2423_s3 + $0x164] sm:$0xf] }
  0xcd   : > { %v515_v13 = vpack.c.bf16 %v505_v9, %v505_v9  ;;  %v1540_v9 = vld [vmem:[%s2423_s3 + $0x110] sm:$0xf]  ;;  %1060 = vmatpush.bf16.msrb.mxu1 %v1549_v3 }
  0xce   : > { %v494_v16 = vpop.f32.mrf.mxu2  ;;  %v1541_v15 = vor.u32 %v1651_v10, %v1540_v9  ;;  %880 = vmatpush.bf16.msrb.mxu3 %v1458_v11  ;;  %v1656_v11 = vld [vmem:[%s2423_s3 + $0x144] sm:$0xf] }
  0xcf   : > { %v521_v18 = vshrl.u32 %v515_v13, 16  ;;  %v498_v19 = vadd.f32 %v494_v16, %v430_v12  ;;  %v524_v25 = vshll.u32 %v515_v13, 16 }
  0xd1   : > { %v2182_v24 = vrot.slane %v521_v18, 7  ;;  %v504_v27 = vadd.f32 %v1727_v52, %v498_v19  ;;  %v1620_v52 = vld [vmem:[%s2423_s3 + $0x14] sm:$0xf]  ;;  %1061 = vmatpush.bf16.msrb.mxu1 %v1541_v15  ;;  %v830_v19 = vunpack.c.h.b16 %v2198_v31 }
  0xd2   : > { %v1470_v63 = vor.u32 %v1620_v52, %v1467_v53  ;;  %v1052_v52 = vsel %vm368_vm0, %v1028_v47, 0  ;;  %v1654_v15 = vld [vmem:[%s2423_s3 + $0x134] sm:$0xf] }
  0xd3   : > { %v526_v35 = vor.u32 %v524_v25, %v2182_v24  ;;  %v506_v36 = vmax.f32 %v504_v27, 0.0  ;;  %v527_v6 = vrot.slane %v2182_v24, 4  ;;  %v1009_v27 = vunpack.c.l.b16 %v1537_v17 }
  0xd4   : > { %907 = vmatpush.bf16.msrb.mxu2 %v1470_v63  ;;  %v848_v31 = vpack.c.b16 %v830_v19, %v830_v19  ;;  %v1550_v19 = vld [vmem:[%s2423_s3 + $0x128] sm:$0xf0] }
  0xd5   : > { %v544_v45 = vsel %vm2185_vm11, %v526_v35, %v543_v20  ;;  %v516_v46 = vpack.c.bf16 %v506_v36, %v506_v36  ;;  %v1027_v38 = vpack.c.b16 %v1009_v27, %v1009_v27 }
  0xd6   : > { %545 = vst [vmem:[#allocation2] sm:$0xf] %v544_v45  ;;  %v871_v50 = vsel %vm368_vm0, %v848_v31, 0 }
  0xd7   : > { %v529_v54 = vshrl.u32 %v516_v46, 16  ;;  %v532_v60 = vshll.u32 %v516_v46, 16  ;;  %v1049_v51 = vsel %vm368_vm0, %v1027_v38, 0  ;;  %v1173_v38 = vld [vmem:[#allocation3 + $0xf8] sm:$0xff] }
  0xd8   : > { %908 = vmatpush.bf16.msrb.mxu2 %v1462_v14 }
  0xd9   : > { %v531_v59 = vrot.slane %v529_v54, 7 }
  0xdb   : > { %v534_v7 = vor.u32 %v532_v60, %v531_v59  ;;  %v536_v8 = vrot.slane %v531_v59, 4  ;;  %v1601_v60 = vor.u32 %v1664_v56, %v1598_v57  ;;  %v1145_v57 = vld [vmem:[#allocation3 + $0x18] sm:$0xff] }
  0xdd   : > { %v535_v12 = vsel %vm2246_vm13, %v527_v6, %v534_v7  ;;  %v550_v13 = vsel %vm2252_vm14, %v536_v8, %v549_v2  ;;  %v552_v16 = vld [vmem:[#allocation2] sm:$0xff]  ;;  %v1582_v2 = vld [vmem:[%s2423_s3 + $0x168] sm:$0xf0]  ;;  %v1574_v6 = vld [vmem:[%s2423_s3 + $0x158] sm:$0xf0] }
  0xde   : > { %546 = vst [vmem:[#allocation2 + $0x8] sm:$0xf] %v535_v12  ;;  %v593_v22 = vunpack.c.l.b16 %v552_v16  ;;  %v594_v21 = vunpack.c.h.b16 %v552_v16  ;;  %v929_v53 = vld [vmem:[#allocation2] sm:$0xee]  ;;  %v1585_v4 = vor.u32 %v1660_v1, %v1582_v2  ;;  %v1577_v8 = vor.u32 %v1658_v5, %v1574_v6  ;;  %v1566_v12 = vld [vmem:[%s2423_s3 + $0x148] sm:$0xf0] }
  0xdf   : > { %551 = vst [vmem:[#allocation2 + $0x10] sm:$0x1] %v550_v13  ;;  %v949_v54 = vunpack.c.l.b16 %v929_v53  ;;  %v950_v3 = vunpack.c.h.b16 %v929_v53  ;;  %v1569_v13 = vor.u32 %v1656_v11, %v1566_v12  ;;  %v1558_v16 = vld [vmem:[%s2423_s3 + $0x138] sm:$0xf0]  ;;  %v1164_v1 = vld [vmem:[#allocation3 + $0xb0] sm:$0xff]  ;;  %v1163_v5 = vld [vmem:[#allocation3 + $0xa8] sm:$0xff] }
  0xe0   : > { %v1561_v17 = vor.u32 %v1654_v15, %v1558_v16  ;;  %v1114_v11 = vld [vmem:[%s2424_s4] sm:$0x3] }
  0xe1   : > { %v1116_v16 = vperm.slane %v1114_v11, 0 }
  0xe5   : > { %v2282_v18 = vld [vmem:[#allocation2 + $0x8] sm:$0xff] }
  0xe6   : > { %v571_v20 = vld [vmem:[#allocation2 + $0x10] sm:$0x11]  ;;  %v595_v23 = vunpack.c.l.b16 %v2282_v18  ;;  %v596_v24 = vunpack.c.h.b16 %v2282_v18  ;;  %v1652_v18 = vld [vmem:[%s2423_s3 + $0x124] sm:$0xf] }
  0xe7   : > { %v597_v25 = vunpack.c.l.b16 %v571_v20  ;;  %v598_v26 = vunpack.c.h.b16 %v571_v20  ;;  %v1553_v20 = vor.u32 %v1652_v18, %v1550_v19 }
  0xe8   : > { %v599_v28 = vpack.c.b16 %v595_v23, %v593_v22  ;;  %v2287_v29 = vpack.c.b16 %v596_v24, %v594_v21  ;;  %v951_v55 = vpack.c.b16 %v595_v23, %v949_v54  ;;  %v952_v7 = vpack.c.b16 %v596_v24, %v950_v3  ;;  %v1650_v22 = vld [vmem:[%s2423_s3 + $0x114] sm:$0xf]  ;;  %v1542_v21 = vld [vmem:[%s2423_s3 + $0x118] sm:$0xf0] }
  0xe9   : > { %v601_v30 = vpack.c.b16 %v597_v25, %v597_v25  ;;  %v2289_v32 = vpack.c.b16 %v598_v26, %v598_v26  ;;  %v1545_v23 = vor.u32 %v1650_v22, %v1542_v21  ;;  %v1146_v54 = vld [vmem:[#allocation3 + $0x20] sm:$0xff] }
  0xea   : > { %v606_v33 = vshll.u32 %v599_v28, 16  ;;  %v618_v34 = vshll.u32 %v2287_v29, 16  ;;  %v604_v35 = vshrl.u32 %v599_v28, 16  ;;  %v616_v40 = vshrl.u32 %v2287_v29, 16 }
  0xeb   : > { %v611_v36 = vshll.u32 %v601_v30, 16  ;;  %v623_v37 = vshll.u32 %v2289_v32, 16  ;;  %v953_v58 = vrot.slane %v951_v55, 1  ;;  %v954_v59 = vrot.slane %v601_v30, 1  ;;  %v1155_v30 = vld [vmem:[#allocation3 + $0x68] sm:$0xff] }
  0xec   : > { %v608_v39 = vrot.slane %v606_v33, 1  ;;  %v620_v41 = vrot.slane %v618_v34, 1  ;;  %v956_v9 = vrot.slane %v952_v7, 1  ;;  %v957_v10 = vrot.slane %v2289_v32, 1  ;;  %v1154_v32 = vld [vmem:[#allocation3 + $0x60] sm:$0xff]  ;;  %v1167_v55 = vld [vmem:[#allocation3 + $0xc8] sm:$0xff] }
  0xed   : > { %v613_v43 = vrot.slane %v611_v36, 1  ;;  %v625_v46 = vrot.slane %v623_v37, 1  ;;  %v955_v63 = vsel %vm446_vm3, %v953_v58, %v954_v59  ;;  %v1153_v36 = vld [vmem:[#allocation3 + $0x58] sm:$0xff]  ;;  %v1152_v37 = vld [vmem:[#allocation3 + $0x50] sm:$0xff]  ;;  %v1166_v58 = vld [vmem:[#allocation3 + $0xc0] sm:$0xff] }
  0xee   : > { %v609_v44 = vor.u32 %v608_v39, %v604_v35  ;;  %v621_v45 = vor.u32 %v620_v41, %v616_v40  ;;  %v958_v14 = vsel %vm446_vm3, %v956_v9, %v957_v10  ;;  %v1151_v39 = vld [vmem:[#allocation3 + $0x48] sm:$0xff]  ;;  %v1172_v40 = vld [vmem:[#allocation3 + $0xf0] sm:$0xff]  ;;  %v1162_v7 = vld [vmem:[#allocation3 + $0xa0] sm:$0xff] }
  0xef   : > { %v1144_v59 = vld [vmem:[#allocation3 + $0x10] sm:$0xff]  ;;  %v1161_v10 = vld [vmem:[#allocation3 + $0x98] sm:$0xff] }
  0xf0   : > { %v614_v48 = vsel %vm324_vm1, %v609_v44, %v613_v43  ;;  %v626_v49 = vsel %vm324_vm1, %v621_v45, %v625_v46  ;;  %v1171_v43 = vld [vmem:[#allocation3 + $0xe8] sm:$0xff]  ;;  %v1149_v45 = vld [vmem:[#allocation3 + $0x38] sm:$0xff]  ;;  %v1170_v46 = vld [vmem:[#allocation3 + $0xe0] sm:$0xff] }
  0xf1   : > { %731 = vmatmul.bf16.vlgmr.msra.gmra.mxu3 %v614_v48  ;;  %1453 = vmatmul.msk.bf16.vlgmr.msrb.gmra.mxu0 %vm713_vm15, %v626_v49 }
  0xf2   : > { %759 = vmatmul.bf16.vlgmr.msra.gmra.mxu1 %v614_v48  ;;  %1454 = vmatmul.msk.bf16.vlgmr.msra.gmra.mxu2 %vm713_vm15, %v626_v49  ;;  %v1148_v49 = vld [vmem:[#allocation3 + $0x30] sm:$0xff] }
  0xf3   : > { %922 = vmatpush.bf16.msrb.mxu0 %v871_v50  ;;  %1075 = vmatpush.bf16.msra.mxu3 %v1049_v51  ;;  %v1169_v50 = vld [vmem:[#allocation3 + $0xd8] sm:$0xff]  ;;  %v1147_v51 = vld [vmem:[#allocation3 + $0x28] sm:$0xff] }
  0xf4   : > { %1103 = vmatpush.bf16.msra.mxu2 %v1052_v52  ;;  %1195 = vmatpush.msra.mxu1 %v1173_v38  ;;  %v1168_v52 = vld [vmem:[#allocation3 + $0xd0] sm:$0xff] }
  0xf6   : > { %1196 = vmatpush.msra.mxu1 %v1172_v40 }
  0xf8   : > { %1197 = vmatpush.msra.mxu1 %v1171_v43 }
  0xfa   : > { %1198 = vmatpush.msra.mxu1 %v1170_v46 }
  0xfc   : > { %1199 = vmatpush.msra.mxu1 %v1169_v50 }
  0xfe   : > { %1200 = vmatpush.msra.mxu1 %v1168_v52 }
 0x100   : > { %1201 = vmatpush.msra.mxu1 %v1167_v55 }
 0x101   : > { %881 = vmatmul.bf16.vlgmr.msrb.gmra.mxu3 %v599_v28  ;;  %1519 = vmatmul.msk.bf16.vlgmr.msra.gmra.mxu0 %vm713_vm15, %v2287_v29 }
 0x102   : > { %909 = vmatmul.bf16.vlgmr.msrb.gmra.mxu2 %v599_v28  ;;  %1062 = vmatmul.bf16.vlgmr.msrb.gmra.mxu1 %v955_v63  ;;  %v1157_v28 = vld [vmem:[#allocation3 + $0x78] sm:$0xff] }
 0x103   : > { %1082 = vmatpush.bf16.msra.mxu0 %v1601_v60  ;;  %1175 = vmatpush.msrb.mxu3 %v1157_v28  ;;  %v1165_v60 = vld [vmem:[#allocation3 + $0xb8] sm:$0xff] }
 0x104   : > { %1202 = vmatpush.msra.mxu1 %v1166_v58 }
 0x106   : > { %1203 = vmatpush.msra.mxu1 %v1165_v60 }
 0x107   : > { %1083 = vmatpush.bf16.msra.mxu0 %v1593_v0  ;;  %v1143_v0 = vld [vmem:[#allocation3 + $0x8] sm:$0xff] }
 0x108   : > { %1204 = vmatpush.msra.mxu1 %v1164_v1 }
 0x10a   : > { %1205 = vmatpush.msra.mxu1 %v1163_v5 }
 0x10b   : > { %1084 = vmatpush.bf16.msra.mxu0 %v1585_v4  ;;  %v1142_v4 = vld [vmem:[#allocation3] sm:$0xff] }
 0x10c   : > { %1206 = vmatpush.msra.mxu1 %v1162_v7 }
 0x10e   : > { %1207 = vmatpush.msra.mxu1 %v1161_v10 }
 0x10f   : > { %1085 = vmatpush.bf16.msra.mxu0 %v1577_v8 }
 0x111   : > { %1520 = vmatmul.msk.bf16.vlgmr.msrb.gmra.mxu0 %vm713_vm15, %v2287_v29  ;;  %1602 = vmatmul.msk.bf16.vlgmr.msra.gmra.mxu3 %vm713_vm15, %v958_v14  ;;  %v1156_v29 = vld [vmem:[#allocation3 + $0x70] sm:$0xff] }
 0x112   : > { %1603 = vmatmul.msk.bf16.vlgmr.msra.gmra.mxu2 %vm713_vm15, %v958_v14  ;;  %1176 = vmatpush.msrb.mxu3 %v1156_v29  ;;  %v1160_v14 = vld [vmem:[#allocation3 + $0x90] sm:$0xff] }
 0x113   : > { %1086 = vmatpush.bf16.msra.mxu0 %v1569_v13  ;;  %1208 = vmatpush.msra.mxu1 %v1160_v14 }
 0x114   : > { %1177 = vmatpush.msrb.mxu3 %v1155_v30 }
 0x116   : > { %1178 = vmatpush.msrb.mxu3 %v1154_v32 }
 0x117   : > { %1087 = vmatpush.bf16.msra.mxu0 %v1561_v17  ;;  %v1159_v17 = vld [vmem:[#allocation3 + $0x88] sm:$0xff] }
 0x118   : > { %1179 = vmatpush.msrb.mxu3 %v1153_v36  ;;  %1209 = vmatpush.msra.mxu1 %v1159_v17 }
 0x11a   : > { %1180 = vmatpush.msrb.mxu3 %v1152_v37 }
 0x11b   : > { %1088 = vmatpush.bf16.msra.mxu0 %v1553_v20 }
 0x11c   : > { %1181 = vmatpush.msrb.mxu3 %v1151_v39 }
 0x11e   : > { %1182 = vmatpush.msrb.mxu3 %v1150_v42 }
 0x11f   : > { %1089 = vmatpush.bf16.msra.mxu0 %v1545_v23  ;;  %v1158_v23 = vld [vmem:[#allocation3 + $0x80] sm:$0xff] }
 0x120   : > { %1183 = vmatpush.msrb.mxu3 %v1149_v45  ;;  %1210 = vmatpush.msra.mxu1 %v1158_v23 }
 0x122   : > { %1090 = vmatmul.bf16.vlgmr.msra.gmra.mxu0 %v955_v63  ;;  %1184 = vmatpush.msrb.mxu3 %v1148_v49 }
 0x124   : > { %1185 = vmatpush.msrb.mxu3 %v1147_v51 }
 0x126   : > { %1186 = vmatpush.msrb.mxu3 %v1146_v54 }
 0x128   : > { %1187 = vmatpush.msrb.mxu3 %v1145_v57 }
 0x12a   : > { %1188 = vmatpush.msrb.mxu3 %v1144_v59 }
 0x12c   : > { %1189 = vmatpush.msrb.mxu3 %v1143_v0 }
 0x12e   : > { %1190 = vmatpush.msrb.mxu3 %v1142_v4 }
 0x16e   : > { %v746_v24 = vpop.f32.mrf.mxu0 }
 0x16f   : > { %v2364_v34 = vpop.f32.mrf.mxu1 }
 0x174   : > { %v732_v25 = vpop.f32.mrf.mxu3 }
 0x175   : > { %v2358_v26 = vpop.f32.mrf.mxu2  ;;  %v747_v62 = vadd.f32 %v746_v24, %v732_v25 }
 0x176   : > { %v2360_v27 = vpop.f32.mrf.mxu0  ;;  %v775_v28 = vadd.f32 %v2358_v26, %v2364_v34 }
 0x177   : > { %v2370_v47 = vpop.f32.mrf.mxu1 }
 0x17c   : > { %v2362_v33 = vpop.f32.mrf.mxu3 }
 0x17d   : > { %v2368_v35 = vpop.f32.mrf.mxu2  ;;  %v749_v8 = vadd.f32 %v2360_v27, %v2362_v33 }
 0x17e   : > { %v2366_v31 = vpop.f32.mrf.mxu0  ;;  %v777_v36 = vadd.f32 %v2368_v35, %v2370_v47 }
 0x17f   : > { %v1063_v61 = vpop.f32.mrf.mxu1 }
 0x184   : > { %v882_v41 = vpop.f32.mrf.mxu3 }
 0x185   : > { %v2372_v48 = vpop.f32.mrf.mxu2  ;;  %v883_v3 = vadd.f32 %v882_v41, %v747_v62  ;;  %v1117_v41 = vperm.slane %v1114_v11, 1 }
 0x186   : > { %v898_v44 = vpop.f32.mrf.mxu0  ;;  %v911_v30 = vadd.f32 %v2372_v48, %v775_v28 }
 0x187   : > { %v897_v12 = vadd.f32 %v2366_v31, %v883_v3  ;;  %v1065_v18 = vpop.f32.mrf.mxu1 }
 0x18c   : > { %v884_v53 = vpop.f32.mrf.mxu3 }
 0x18d   : > { %v912_v63 = vpop.f32.mrf.mxu2  ;;  %v885_v13 = vadd.f32 %v884_v53, %v749_v8 }
 0x18e   : > { %v924_v56 = vpop.f32.mrf.mxu0  ;;  %v913_v39 = vadd.f32 %v912_v63, %v777_v36 }
 0x18f   : > { %v899_v20 = vadd.f32 %v898_v44, %v885_v13  ;;  %v925_v37 = vadd.f32 %v924_v56, %v911_v30 }
 0x194   : > { %v1077_v2 = vpop.f32.mrf.mxu3 }
 0x195   : > { %v1078_v9 = vadd.f32 %v1077_v2, %v1063_v61  ;;  %v1105_v22 = vpop.f32.mrf.mxu2  ;;  %v1174_v61 = vld [vmem:[%s2426_s6] sm:$0x1] }
 0x196   : > { %v926_v6 = vpop.f32.mrf.mxu0 }
 0x197   : > { %v1110_v15 = vadd.f32 %v1078_v9, %v897_v12  ;;  %v927_v45 = vadd.f32 %v926_v6, %v913_v39 }
 0x199   : > { %v1120_v24 = vadd.f32 %v1116_v16, %v1110_v15 }
 0x19b   : > { %v1124_v33 = vmax.f32 %v1120_v24, 0.0 }
 0x19c   : > { %v1079_v19 = vpop.f32.mrf.mxu3 }
 0x19d   : > { %v1080_v21 = vadd.f32 %v1079_v19, %v1065_v18  ;;  %v1107_v43 = vpop.f32.mrf.mxu2 }
 0x19f   : > { %v1112_v25 = vadd.f32 %v1080_v21, %v899_v20  ;;  %v1091_v27 = vpop.f32.mrf.mxu0 }
 0x1a0   : > { %v1106_v32 = vadd.f32 %v1105_v22, %v1091_v27 }
 0x1a1   : > { %v1122_v29 = vadd.f32 %v1116_v16, %v1112_v25 }
 0x1a2   : > { %v1111_v40 = vadd.f32 %v1106_v32, %v925_v37 }
 0x1a3   : > { %v1126_v31 = vmax.f32 %v1122_v29, 0.0 }
 0x1a4   : > { %v1121_v46 = vadd.f32 %v1117_v41, %v1111_v40 }
 0x1a5   : > { %v1128_v38 = vadd.f32 %v1126_v31, %v1124_v33 }
 0x1a6   : > { %v1125_v52 = vmax.f32 %v1121_v46, 0.0 }
 0x1a7   : > { %v1129_v42 = vrot.slane %v1128_v38, 4  ;;  %v1093_v44 = vpop.f32.mrf.mxu0 }
 0x1a8   : > { %v1108_v26 = vadd.f32 %v1107_v43, %v1093_v44 }
 0x1a9   : > { %v1130_v34 = vadd.f32 %v1129_v42, %v1128_v38 }
 0x1aa   : > { %v1113_v49 = vadd.f32 %v1108_v26, %v927_v45 }
 0x1ab   : > { %v1131_v48 = vrot.slane %v1130_v34, 2 }
 0x1ac   : > { %v1123_v50 = vadd.f32 %v1117_v41, %v1113_v49 }
 0x1ad   : > { %v1132_v51 = vadd.f32 %v1131_v48, %v1130_v34 }
 0x1ae   : > { %v1127_v35 = vmax.f32 %v1123_v50, 0.0 }
 0x1af   : > { %v1133_v47 = vrot.slane %v1132_v51, 1 }
 0x1b0   : > { %v1135_v53 = vadd.f32 %v1127_v35, %v1125_v52 }
 0x1b1   : > { %v1134_v54 = vadd.f32 %v1133_v47, %v1132_v51 }
 0x1b2   : > { %v1136_v55 = vrot.slane %v1135_v53, 4 }
 0x1b3   : > { %1191 = vmatmul.f32.vlgmr.msrb.gmra.mxu3 %v1134_v54 }
 0x1b4   : > { %v1137_v56 = vadd.f32 %v1136_v55, %v1135_v53 }
 0x1b6   : > { %v1138_v57 = vrot.slane %v1137_v56, 2 }
 0x1b8   : > { %v1139_v58 = vadd.f32 %v1138_v57, %v1137_v56 }
 0x1ba   : > { %v1140_v59 = vrot.slane %v1139_v58, 1 }
 0x1bc   : > { %v1141_v60 = vadd.f32 %v1140_v59, %v1139_v58 }
 0x1be   : > { %1211 = vmatmul.f32.vlgmr.msra.gmra.mxu1 %v1141_v60 }
 0x236   : > { %v1192_v62 = vpop.f32.mrf.mxu3 }
 0x237   : > { %v1193_v63 = vadd.f32 %v1192_v62, %v1174_v61 }
 0x23b   : > { %v1212_v0 = vpop.f32.mrf.mxu1 }
 0x23c   : > { %v1213_v1 = vadd.f32 %v1212_v0, %v1193_v63 }
 0x23e   : > { %1215 = vst [vmem:[%s287_s9] sm:$0x1] %v1213_v1 }
 0x23f   : > { %1785 = shalt.err (!%p1782_p8)
}
 0x240   : > { %1678 = dma.vmem_to_hbm [thread:$0]  (%p1908_p5), %s1228_s13, 16, %s1230_s14, %s1217_s15  }
 0x241 PF: > { %p1690_p9 = scmp.ge.s32.totalorder %s1824_s27, 2  ;;  %s1241_s20 = sand.u32 1, %s1812_s24  }
 0x242   : > { %s1242_s23 = scalar_lea.sflag [#allocation5], %s1241_s20 }
 0x243   : > { %p1685_p10 = pnand %p1690_p9, %p1912_p6 }
 0x245   : > { %p1686_p11 = pneg %p1685_p10 }
 0x247   : > { %1807 = dma.done.wait (%p1686_p11), %s1242_s23, 16  }
 0x248   : > { %1809 = vsyncadd (%p1686_p11), %s1242_s23, 4294967280  ;;  %p18_p12 = scmp.ge.s32.totalorder %s1895_s30, 4   ;;  %s2436_s24 = smov %s1816_s25 }
 0x249   : > { %s2437_s25 = smov %s1820_s26  ;;  %s2438_s26 = smov %s1906_s10 }
 0x24a   : > { %s2439_s27 = smov %s1895_s30  ;;  %20 = sbr.rel (!%p18_p12) target bundleno = 4 (0x4), region = 92 }
 0x24f   :  { %1247 = vsyncpa [#allocation4], 1 }
 0x250   :  { %1249 = vsyncpa [#allocation4 + $0x1], 1 }
 0x251   :  { %1250 = vsyncpa [#allocation5], 1 }
 0x252   :  { %1252 = vsyncpa [#allocation5 + $0x1], 1 }

</bundles_post_ra>
